<compile_context>
chip_gen: v7x
topology: tpu7x:2x2x1
jax: 0.10.0
libtpu: 0.0.40
codegen_flags: <defaults>
</compile_context>

<pallas_src>
import functools

import jax
import jax.numpy as jnp
from jax.experimental import pallas as pl
from jax.experimental.pallas import tpu as pltpu


def _ganloss_kernel(prob_ref, target_ref, reward_ref, partial_ref, *,
                    n_rows, tile_rows, select_in_native_dtype):
    """One row tile: partial <- sum_i prob[i, target[i]] * reward[i] over valid rows."""
    i = pl.program_id(0)

    prob = prob_ref[...]                               # (TM, C) native dtype
    if not select_in_native_dtype:
        # v5e has no bf16 VALU; callers may request an up-front upcast there.
        prob = prob.astype(jnp.float32)
    tgt = target_ref[...]                              # (TM, 1) int32
    rwd = reward_ref[...]                              # (TM, 1) f32

    # One-hot column select in the native dtype (packed bf16 vregs on v6e/v7x),
    # upcast folded into the f32 row reduction.
    col_ids = jax.lax.broadcasted_iota(jnp.int32, prob.shape, 1)
    picked = jnp.where(col_ids == tgt, prob, jnp.zeros_like(prob))
    per_row = jnp.sum(picked.astype(jnp.float32), axis=1, keepdims=True)   # (TM, 1)

    # Row-validity mask for the ragged last tile, applied on the (TM,1) result via
    # select (NOT multiply-by-zero: OOB pad rows may hold NaN/Inf and NaN*0 = NaN).
    row_ids = jax.lax.broadcasted_iota(jnp.int32, per_row.shape, 0) + i * tile_rows
    valid = row_ids < n_rows
    partial = jnp.sum(jnp.where(valid, per_row * rwd, 0.0))

    # Lane-dense (1,8,128) output block; scalar written only at [0,0,0] so a plain
    # jnp.sum(partials) in the wrapper is also correct (no 1024x inflation hazard).
    out_r = jax.lax.broadcasted_iota(jnp.int32, partial_ref.shape, 1)
    out_c = jax.lax.broadcasted_iota(jnp.int32, partial_ref.shape, 2)
    partial_ref[...] = jnp.where((out_r == 0) & (out_c == 0), partial, 0.0)


def _default_budgets():
    """(tile_bytes, vmem_limit_bytes) sized per TPU generation."""
    vmem_bytes = None
    try:
        info = pltpu.get_tpu_info()
        vmem_bytes = getattr(info, "vmem_capacity_bytes", None)
    except Exception:  # info unavailable at trace time -> conservative defaults
        vmem_bytes = None
    if vmem_bytes is not None and vmem_bytes >= 96 * 1024 * 1024:
        # v5e / v6e: 128 MiB physical VMEM -> large tiles amortize the ~0.35us/step cost.
        return 16 * 1024 * 1024, 64 * 1024 * 1024
    # v7x (64 MiB per TC, 2 TCs share the grid) or unknown generation: keep headroom.
    return 8 * 1024 * 1024, 48 * 1024 * 1024


def gan_loss(prob, target, reward, *, tile_bytes=None, max_tile_rows=None,
             vmem_limit_bytes=None, prob_buffers=2, select_in_native_dtype=True):
    """prob: (N, C) f32/bf16, target: (N,) int, reward: (N,) -> scalar f32 loss."""
    N, C = prob.shape
    target_col = target.reshape(N, 1).astype(jnp.int32)
    reward_col = reward.reshape(N, 1).astype(jnp.float32)

    itemsize = jnp.dtype(prob.dtype).itemsize
    # dtype-native sublane multiple: 8 for f32, 16 for bf16, 32 for int8/fp8.
    sublane = max(8, 32 // max(1, itemsize))

    default_tile_bytes, default_vmem_limit = _default_budgets()
    if tile_bytes is None:
        tile_bytes = default_tile_bytes
    if vmem_limit_bytes is None:
        vmem_limit_bytes = default_vmem_limit

    rows_for_budget = max(
        sublane, (tile_bytes // max(1, C * itemsize)) // sublane * sublane)
    n_rounded = ((N + sublane - 1) // sublane) * sublane
    tile_rows = min(rows_for_budget, n_rounded)
    if max_tile_rows is not None:
        tile_rows = min(tile_rows, max(sublane, (max_tile_rows // sublane) * sublane))
    grid_n = pl.cdiv(N, tile_rows)

    kernel = functools.partial(
        _ganloss_kernel, n_rows=N, tile_rows=tile_rows,
        select_in_native_dtype=select_in_native_dtype)

    # Optional deeper prefetch on the streamed prob tile (use if profiling shows
    # exposed DMA at tile boundaries once per-tile compute is this small).
    prob_spec_kwargs = {}
    if prob_buffers is not None and prob_buffers > 2:
        prob_spec_kwargs["pipeline_mode"] = pl.Buffered(prob_buffers)
    prob_spec = pl.BlockSpec((tile_rows, C), lambda i: (i, 0), **prob_spec_kwargs)

    partials = pl.pallas_call(
        kernel,
        out_shape=jax.ShapeDtypeStruct((grid_n, 8, 128), jnp.float32),
        grid=(grid_n,),
        in_specs=[
            prob_spec,                                        # prob row tile
            pl.BlockSpec((tile_rows, 1), lambda i: (i, 0)),   # target column tile
            pl.BlockSpec((tile_rows, 1), lambda i: (i, 0)),   # reward column tile
        ],
        out_specs=pl.BlockSpec((1, 8, 128), lambda i: (i, 0, 0)),
        compiler_params=pltpu.CompilerParams(
            dimension_semantics=("parallel",),   # lets v7x shard tiles over 2 TCs
            vmem_limit_bytes=vmem_limit_bytes,
        ),
    )(prob, target_col, reward_col)

    # Tiny final reduction over per-tile partials + negate.
    return -jnp.sum(partials[:, 0, 0])


if __name__ == "__main__":
    key = jax.random.PRNGKey(0)
    k1, k2, k3 = jax.random.split(key, 3)

    # Small shapes consistent with (N, C) prob / (N,) target / (N,) reward;
    # N is NOT a multiple of the forced tile size so the ragged-last-tile mask runs.
    N, C = 20, 64
    logits = jax.random.normal(k1, (N, C), dtype=jnp.float32)
    prob = jax.nn.log_softmax(logits, axis=-1)
    target = jax.random.randint(k2, (N,), 0, C, dtype=jnp.int32)
    reward = jax.random.uniform(k3, (N,), dtype=jnp.float32)

    # f32 path: force small tiles (TM=8 -> 3 grid steps) to exercise tiling + masking.
    loss = gan_loss(prob, target, reward, max_tile_rows=8)
    jax.block_until_ready(loss)
    ref = -jnp.sum(prob[jnp.arange(N), target] * reward)
    assert jnp.allclose(loss, ref, rtol=1e-5, atol=1e-5), (loss, ref)

    # bf16 streaming path (half the HBM bytes; select stays in packed bf16 vregs,
    # upcast only inside the f32 reduction). TM=16 (bf16 sublane multiple) -> ragged.
    prob_bf16 = prob.astype(jnp.bfloat16)
    loss_bf16 = gan_loss(prob_bf16, target, reward, max_tile_rows=16)
    jax.block_until_ready(loss_bf16)
    ref_bf16 = -jnp.sum(prob_bf16.astype(jnp.float32)[jnp.arange(N), target] * reward)
    assert jnp.allclose(loss_bf16, ref_bf16, rtol=1e-3, atol=1e-3), (loss_bf16, ref_bf16)

    print("KERNEL_OK")
</pallas_src>

<mosaic_0001>
module attributes {stable_mosaic.version = 11 : i64} {
  func.func @_ganloss_kernel(%arg0: i32, %arg1: memref<8x64xf32, #tpu.memory_space<vmem>>, %arg2: memref<8x1xi32, #tpu.memory_space<vmem>>, %arg3: memref<8x1xf32, #tpu.memory_space<vmem>>, %arg4: memref<1x8x128xf32, #tpu.memory_space<vmem>>) attributes {dimension_semantics = [#tpu.dimension_semantics<parallel>], iteration_bounds = array<i64: 3>, scalar_prefetch = 0 : i64, scratch_operands = 0 : i64, tpu.core_type = #tpu.core_type<tc>, window_params = [{transform_indices = @transform_0, window_bounds = array<i64: 8, 64>}, {transform_indices = @transform_1, window_bounds = array<i64: 8, 1>}, {transform_indices = @transform_2, window_bounds = array<i64: 8, 1>}, {transform_indices = @transform_3, window_bounds = array<i64: 1, 8, 128>}]} {
    %c0 = arith.constant 0 : index
    %c0_0 = arith.constant 0 : index
    %0 = vector.load %arg1[%c0, %c0_0] : memref<8x64xf32, #tpu.memory_space<vmem>>, vector<8x64xf32>
    %c0_1 = arith.constant 0 : index
    %c0_2 = arith.constant 0 : index
    %1 = vector.load %arg2[%c0_1, %c0_2] : memref<8x1xi32, #tpu.memory_space<vmem>>, vector<8x1xi32>
    %c0_3 = arith.constant 0 : index
    %c0_4 = arith.constant 0 : index
    %2 = vector.load %arg3[%c0_3, %c0_4] : memref<8x1xf32, #tpu.memory_space<vmem>>, vector<8x1xf32>
    %3 = tpu.iota {dimensions = array<i32: 1>} : vector<8x64xi32>
    %4 = vector.broadcast %1 : vector<8x1xi32> to vector<8x64xi32>
    %5 = arith.cmpi eq, %3, %4 : vector<8x64xi32>
    %cst = arith.constant 0.000000e+00 : f32
    %6 = vector.broadcast %cst : f32 to vector<8x64xf32>
    %7 = arith.select %5, %0, %6 : vector<8x64xi1>, vector<8x64xf32>
    %cst_5 = arith.constant dense<0.000000e+00> : vector<8xf32>
    %8 = vector.multi_reduction <add>, %7, %cst_5 [1] : vector<8x64xf32> to vector<8xf32>
    %9 = vector.shape_cast %8 : vector<8xf32> to vector<8x1xf32>
    %10 = tpu.iota {dimensions = array<i32: 0>} : vector<8x1xi32>
    %c8_i32 = arith.constant 8 : i32
    %11 = arith.muli %arg0, %c8_i32 : i32
    %12 = vector.broadcast %11 : i32 to vector<8x1xi32>
    %13 = arith.addi %10, %12 : vector<8x1xi32>
    %c20_i32 = arith.constant 20 : i32
    %14 = vector.broadcast %c20_i32 : i32 to vector<8x1xi32>
    %15 = arith.cmpi slt, %13, %14 : vector<8x1xi32>
    %16 = arith.mulf %9, %2 : vector<8x1xf32>
    %cst_6 = arith.constant 0.000000e+00 : f32
    %17 = vector.broadcast %cst_6 : f32 to vector<8x1xf32>
    %18 = arith.select %15, %16, %17 : vector<8x1xi1>, vector<8x1xf32>
    %19 = vector.shape_cast %18 : vector<8x1xf32> to vector<1x8x1xf32>
    %cst_7 = arith.constant dense<0.000000e+00> : vector<1xf32>
    %20 = vector.multi_reduction <add>, %19, %cst_7 [1, 2] : vector<1x8x1xf32> to vector<1xf32>
    %21 = vector.shape_cast %20 : vector<1xf32> to vector<1x1x1xf32>
    %22 = vector.extract %21[0, 0, 0] : f32 from vector<1x1x1xf32>
    %23 = tpu.iota {dimensions = array<i32: 1>} : vector<1x8x128xi32>
    %24 = tpu.iota {dimensions = array<i32: 2>} : vector<1x8x128xi32>
    %c0_i32 = arith.constant 0 : i32
    %25 = vector.broadcast %c0_i32 : i32 to vector<1x8x128xi32>
    %26 = arith.cmpi eq, %23, %25 : vector<1x8x128xi32>
    %c0_i32_8 = arith.constant 0 : i32
    %27 = vector.broadcast %c0_i32_8 : i32 to vector<1x8x128xi32>
    %28 = arith.cmpi eq, %24, %27 : vector<1x8x128xi32>
    %29 = arith.andi %26, %28 : vector<1x8x128xi1>
    %cst_9 = arith.constant 0.000000e+00 : f32
    %30 = vector.broadcast %22 : f32 to vector<1x8x128xf32>
    %31 = vector.broadcast %cst_9 : f32 to vector<1x8x128xf32>
    %32 = arith.select %29, %30, %31 : vector<1x8x128xi1>, vector<1x8x128xf32>
    %c0_10 = arith.constant 0 : index
    %c0_11 = arith.constant 0 : index
    %c0_12 = arith.constant 0 : index
    %33 = vector.load %arg4[%c0_10, %c0_11, %c0_12] : memref<1x8x128xf32, #tpu.memory_space<vmem>>, vector<1x8x128xf32>
    tpu.vector_store %arg4[%c0_10, %c0_11, %c0_12], %32 {strides = array<i32>} : memref<1x8x128xf32, #tpu.memory_space<vmem>>, vector<1x8x128xf32>,
    return
  }
  func.func @transform_0(%arg0: i32) -> (i32, i32) {
    %c0_i32 = arith.constant 0 : i32
    %c0_i32_0 = arith.constant 0 : i32
    return %arg0, %c0_i32 : i32, i32
  }
  func.func @transform_1(%arg0: i32) -> (i32, i32) {
    %c0_i32 = arith.constant 0 : i32
    %c0_i32_0 = arith.constant 0 : i32
    return %arg0, %c0_i32 : i32, i32
  }
  func.func @transform_2(%arg0: i32) -> (i32, i32) {
    %c0_i32 = arith.constant 0 : i32
    %c0_i32_0 = arith.constant 0 : i32
    return %arg0, %c0_i32 : i32, i32
  }
  func.func @transform_3(%arg0: i32) -> (i32, i32, i32) {
    %c0_i32 = arith.constant 0 : i32
    %c0_i32_0 = arith.constant 0 : i32
    %c0_i32_1 = arith.constant 0 : i32
    return %arg0, %c0_i32, %c0_i32_0 : i32, i32, i32
  }
}

</mosaic_0001>

<bundles_post_ra>
// kernel: tpu_custom_call.1
= control target key start
LH: loop header
LB: loop body
LE: loop exit
PB: predicated region body
PF: predicated region fallthrough
CT: control target
= control target key end

     0   :  { %8 = vsyncpa [#allocation3], 0  ;;  %s585_s0 = inlined_call_operand.vmem [shape: f32[20,64], index: 0, kind: input, shape index: {}]   ;;  %s586_s1 = inlined_call_operand.vmem [shape: s32[20,1], index: 1, kind: input, shape index: {}]   ;;  %s587_s2 = inlined_call_operand.vmem [shape: f32[20,1], index: 2, kind: input, shape index: {}]   ;;  %s588_s3 = inlined_call_operand.hbm [shape: f32[3,8,128], index: 3, kind: output, shape index: {}]  }
   0x1   :  { %10 = vsyncpa [#allocation3 + $0x1], 0  ;;  %s478_s12 = smov 0   ;;  %s480_s13 = smov 0  }
   0x2   :  { %s482_s14 = smov 0   ;;  %s484_s15 = smov 0  }
   0x3 LB: > { %s499_s16 = sadd.s32 4294967295, %s454_s15   ;;  %s336_s17 = sadd.s32 4294967294, %s454_s15   ;;  %s454_s15 = sphi %s484_s15, %s594_s15   ;;  %s450_s14 = sphi %s482_s14, %s593_s14   ;;  %s446_s13 = sphi %s480_s13, %s592_s13   ;;  %s442_s12 = sphi %s478_s12, %s591_s12  }
   0x4   : > { %s503_s18 = sadd.s32 1, %s454_s15   ;;  %s101_s19 = sadd.s32 1, %s450_s14 }
   0x5   : > { %s98_s20 = ssub.s32 %s454_s15, %s503_s18  ;;  %p111_p0 = scmp.ne.s32.totalorder %s450_s14, %s446_s13 }
   0x6   : > { %p99_p1 = scmp.eq.s32.totalorder %s98_s20, 0  ;;  %p112_p2 = scmp.eq.s32.totalorder %s499_s16, 2 }
   0x7   : > { %p117_p3 = scmp.ne.s32.totalorder %s446_s13, %s442_s12  ;;  %p118_p4 = scmp.eq.s32.totalorder %s336_s17, 2 }
   0x8   : > { %s514_s21 = scalar_select %p99_p1, %s450_s14, %s101_s19  }
   0x9   : > { %p516_p5 = por %p112_p2, %p111_p0  ;;  %p520_p6 = por %p118_p4, %p117_p3 }
   0xa   : > { %p339_p7 = scmp.ge.s32.totalorder %s454_s15, 1  ;;  %p157_p8 = scmp.lt.s32.totalorder %s454_s15, 4 }
   0xc   : > { %p158_p9 = pnand %p339_p7, %p157_p8 }
   0xd   : > { %p188_p10 = scmp.lt.s32.totalorder (!%p158_p9), %s499_s16, 2  ;;  %v456_v0 = vmov (!%p158_p9), 0   ;;  %v203_v2 = vlaneseq (!%p158_p9)  ;;  %vm210_vm0 = vcmask (!%p158_p9), 523264   ;;  %s344_s5 = sshll.u32 (!%p158_p9), %s499_s16, 3  ;;  %vm222_vm3 = vcmask (!%p158_p9), 7168  }
   0xe   : > { %161 = sbr.rel (%p158_p9) target bundleno = 523 (0x20b), region = 32  ;;  %391 = vset.pattern.permute.xlu0 (!%p158_p9), %v456_v0  ;;  %v217_v9 = vstv (!%p158_p9), %s344_s5  ;;  %s185_s9 = sand.u32 (!%p158_p9), 1, %s446_s13  }
   0xf   : > { %v204_v3 = vand.u32 (!%p158_p9), 127, %v203_v2  ;;  %v215_v8 = vshrl.u32 (!%p158_p9), %v203_v2, 7  ;;  %s340_s10 = sshll.u32 (!%p158_p9), %s185_s9, 3  ;;  %s346_s11 = sshll.u32 (!%p158_p9), %s499_s16, 7 }
  0x10   : > { %s187_s17 = scalar_lea.vmem (!%p158_p9), [#allocation2], %s340_s10  ;;  %s543_s26 = scalar_lea.hbm (!%p158_p9), %s588_s3, %s346_s11 }
  0x11   : > { %v218_v10 = vadd.s32 (!%p158_p9), %v217_v9, %v215_v8  ;;  %vm233_vm4 = vcmp.eq.s32.totalorder (!%p158_p9), %v215_v8, 0  ;;  %vm234_vm5 = vcmp.eq.s32.totalorder (!%p158_p9), %v204_v3, 0  ;;  %s253_s19 = sshll.u32 (!%p158_p9), %s187_s17, 4  ;;  %s240_s27 = scalar_lea.sflag (!%p158_p9), [#allocation3], %s185_s9  ;;  %s545_s19 = int_to_ptr.vmem [resolvable:$true] %s253_s19 }
  0x12   : > { %vm235_vm6 = vmand (!%p158_p9), %vm233_vm4, %vm234_vm5 }
  0x13   : > { %vm219_vm2 = vcmp.lt.s32.totalorder (!%p158_p9), %v218_v10, 20 }
  0x15   : > { %s189_s24 = scalar_select %p188_p10, %s499_s16, 2 }
  0x16   : > { %s457_s16 = smov [#allocation2]  }
  0x17   : > { %s341_s25 = sshll.u32 %s189_s24, 3  ;;  %s396_s29 = sshll.u32 %s457_s16, 4  ;;  %s397_s29 = int_to_ptr.vmem [resolvable:$false] %s396_s29 }
  0x18   : > { %s195_s28 = scalar_lea.vmem %s586_s1, %s341_s25  ;;  %s191_s4 = scalar_lea.vmem %s585_s0, %s341_s25 }
  0x19   : > { %v201_v1 = vld [vmem:[%s195_s28] sm:$0xff]  ;;  %s199_s8 = scalar_lea.vmem %s587_s2, %s341_s25  ;;  %s392_s28 = scalar_lea.vmem %s545_s19, 128 }
  0x1a   : > { %206 = vperm.xlu0 %391, %v201_v1   ;;  %v200_v4 = vld [vmem:[%s191_s4] sm:$0xff]  ;;  %p393_p11 = scmp.ne.s32.totalorder %s545_s19, %s392_s28  ;;  %s398_s30 = scalar_lea.vmem %s397_s29, 256 }
  0x1b   : > { %v202_v11 = vld [vmem:[%s199_s8] sm:$0xff]  ;;  %p399_p0 = scmp.lt.s32.totalorder %s545_s19, %s397_s29  ;;  %p400_p1 = scmp.lt.s32.totalorder %s398_s30, %s392_s28 }
  0x1c   : > { %p394_p12 = pnand %p393_p11, %p516_p5 }
  0x1d   : > { %p401_p2 = por %p400_p1, %p399_p0 }
  0x1e   : > { %p395_p13 = pneg %p394_p12 }
  0x20   : > { %p402_p3 = pnand %p401_p2, %p395_p13 }
  0x99   : > { %v207_v5 = vpop.permute.xlu0 %206 }
  0x9a   : > { %vm208_vm1 = vcmp.eq.s32.totalorder %v204_v3, %v207_v5 }
  0x9b   : > { %v209_v6 = vsel %vm208_vm1, %v200_v4, 0.0 }
  0x9c   : > { %v211_v7 = vsel %vm210_vm0, %v209_v6, 0.0 }
  0x9d   : > { %212 = vadd.xlane.f32.xlu0 %v211_v7 }
 0x12a   : > { %v213_v12 = vpop.xlane.xlu0 %212 }
 0x12b   : > { %v220_v13 = vmul.f32 %v213_v12, %v202_v11 }
 0x12d   : > { %v221_v14 = vsel %vm219_vm2, %v220_v13, 0.0 }
 0x12e   : > { %v223_v15 = vsel %vm222_vm3, %v221_v14, 0.0 }
 0x12f   : > { %224 = vadd.xlane.f32.xlu1 %v223_v15 }
 0x1bc   : > { %v225_v16 = vpop.xlane.xlu1 %224 }
 0x1bd   : > { %v226_v17 = vrot.slane %v225_v16, 4 }
 0x1bf   : > { %v227_v18 = vadd.f32 %v226_v17, %v225_v16 }
 0x1c1   : > { %v228_v19 = vrot.slane %v227_v18, 2 }
 0x1c3   : > { %v229_v20 = vadd.f32 %v228_v19, %v227_v18 }
 0x1c5   : > { %v230_v21 = vrot.slane %v229_v20, 1 }
 0x1c7   : > { %v231_v22 = vadd.f32 %v230_v21, %v229_v20 }
 0x1c9   : > { %349 = vpush %v231_v22 }
 0x1fa   : > { %s350_s20 = spop %349 }
 0x1fb   : > { %v236_v23 = vstv %s350_s20 }
 0x1fc   : > { %v237_v24 = vsel %vm235_vm6, %v236_v23, 0.0 }
 0x1fd   : > { %238 = vst [vmem:[%s187_s17] sm:$0xff] %v237_v24 }
 0x1fe   : > { %405 = shalt.err (!%p402_p3)
}
 0x1ff   : > { %s406_s4 = scalar_lea.hbm %s543_s26, 128  ;;  %s410_s7 = scalar_lea.hbm %s588_s3, 384 }
 0x200   : > { %p407_p4 = scmp.ne.s32.totalorder %s543_s26, %s406_s4  ;;  %p411_p9 = scmp.lt.u32.totalorder %s543_s26, %s588_s3 }
 0x201   : > { %p412_p10 = scmp.lt.u32.totalorder %s410_s7, %s406_s4  ;;  %p414_p12 = scmp.lt.u32.totalorder %s406_s4, %s543_s26 }
 0x202   : > { %p408_p7 = pnand %p407_p4, %p516_p5 }
 0x203   : > { %p413_p11 = por %p412_p10, %p411_p9 }
 0x204   : > { %p409_p8 = pneg %p408_p7 }
 0x205   : > { %p415_p13 = por %p414_p12, %p413_p11 }
 0x207   : > { %p416_p0 = pnand %p415_p13, %p409_p8 }
 0x209   : > { %419 = shalt.err (!%p416_p0)
}
 0x20a   : > { %351 = dma.vmem_to_hbm [thread:$0]  (%p516_p5), %s545_s19, 128, %s543_s26, %s240_s27  }
 0x20b PF: > { %p357_p1 = scmp.ge.s32.totalorder %s454_s15, 2  ;;  %s265_s10 = sand.u32 1, %s442_s12  }
 0x20c   : > { %s266_s11 = scalar_lea.sflag [#allocation3], %s265_s10 }
 0x20d   : > { %p354_p2 = pnand %p357_p1, %p520_p6 }
 0x20f   : > { %437 = dma.done.wait (!%p354_p2), %s266_s11, 128  }
 0x210   : > { %439 = vsyncadd (!%p354_p2), %s266_s11, 4294967168  ;;  %p13_p3 = scmp.ge.s32.totalorder %s503_s18, 5   ;;  %s591_s12 = smov %s446_s13 }
 0x211   : > { %s592_s13 = smov %s450_s14  ;;  %s593_s14 = smov %s514_s21 }
 0x212   : > { %s594_s15 = smov %s503_s18  ;;  %15 = sbr.rel (!%p13_p3) target bundleno = 3 (0x3), region = 73 }
 0x219   :  { %271 = vsyncpa [#allocation3], 1 }
 0x21a   :  { %273 = vsyncpa [#allocation3 + $0x1], 1 }

</bundles_post_ra>
